<compile_context>
chip_gen: v7x
topology: tpu7x:2x2x1
jax: 0.10.0
libtpu: 0.0.40
codegen_flags: <defaults>
</compile_context>

<pallas_src>
import jax
import jax.numpy as jnp
from jax import lax
from jax.experimental import pallas as pl
from jax.experimental.pallas import tpu as pltpu

# ---------------- configuration (small synthetic shapes) ----------------
B = 2          # batch
N = 8          # sequence length (tokens)
DIM = 32       # embedding dim
HEADS = 4
DIM_HEAD = 16
INNER = HEADS * DIM_HEAD        # 64
BN = B * N                      # 16  (all tokens of all batch items)
SLAB = 128                      # lane-tile width each per-head q/k/v slab is padded to
SCALE = DIM_HEAD ** (-0.5)
NEG = -1e30                     # additive mask for cross-batch attention blocks
# dropout = 0.0 -> identity (nothing to implement)


def attention_kernel(x_ref, wqkv_ref, wout_ref, bias_ref, mask_ref, o_ref):
    # x_ref:    (BN, DIM)              bf16  all tokens of all batch items
    # wqkv_ref: (DIM, 3*HEADS*SLAB)    bf16  per-head slabs padded to 128 lanes, SCALE folded into Q
    # wout_ref: (HEADS*SLAB, DIM)      bf16  per-head row slabs padded to 128 rows
    # bias_ref: (1, DIM)               f32
    # mask_ref: (BN, BN)               f32   block-diagonal additive mask (0 / -1e30)
    # o_ref:    (BN, DIM)              f32

    # One bf16 MXU matmul for the whole batch's QKV projection (f32 accumulate).
    qkv = jnp.dot(x_ref[...], wqkv_ref[...],
                  preferred_element_type=jnp.float32)        # (BN, 3*HEADS*SLAB)
    neg_mask = mask_ref[...]                                  # (BN, BN)

    # Contract the last dim of both operands: q @ k^T without materializing k.T.
    dn = (((1,), (1,)), ((), ()))

    acc = None
    for h in range(HEADS):                                    # static loop (4 iters)
        # Whole-lane-tile slices (offsets are multiples of 128) -> no relayout.
        q = qkv[:, (0 * HEADS + h) * SLAB:(0 * HEADS + h + 1) * SLAB].astype(jnp.bfloat16)
        k = qkv[:, (1 * HEADS + h) * SLAB:(1 * HEADS + h + 1) * SLAB].astype(jnp.bfloat16)
        v = qkv[:, (2 * HEADS + h) * SLAB:(2 * HEADS + h + 1) * SLAB].astype(jnp.bfloat16)

        # Scores for both batch items at once; cross-batch blocks masked away.
        # SCALE is already folded into the Q weights.
        dots = lax.dot_general(q, k, dn, preferred_element_type=jnp.float32) + neg_mask

        # Numerically stable softmax over keys (f32 statistics, EUP approx recip).
        m = jnp.max(dots, axis=-1, keepdims=True)
        e = jnp.exp(dots - m)
        s = jnp.sum(e, axis=-1, keepdims=True)
        p = (e * pl.reciprocal(s, approx=True)).astype(jnp.bfloat16)

        # attn @ v (masked entries are exactly 0 -> no cross-batch mixing).
        out_h = jnp.dot(p, v, preferred_element_type=jnp.float32)       # (BN, SLAB)

        # Decomposed output projection: accumulate this head's contribution.
        w_h = wout_ref[h * SLAB:(h + 1) * SLAB, :]                      # (SLAB, DIM)
        contrib = jnp.dot(out_h.astype(jnp.bfloat16), w_h,
                          preferred_element_type=jnp.float32)           # (BN, DIM)
        acc = contrib if acc is None else acc + contrib

    o_ref[...] = (acc + bias_ref[...]).astype(o_ref.dtype)


def prepare_params(w_qkv, w_out, b_out):
    """One-time layout plumbing (done at parameter-init time, not per call)."""
    w_qkv_t = jnp.asarray(w_qkv, jnp.float32).T                          # (DIM, 3*INNER)

    # Pad each per-head q/k/v column block to a full 128-lane slab; fold SCALE into Q.
    wqkv_pad = jnp.zeros((DIM, 3 * HEADS * SLAB), jnp.float32)
    for which in range(3):                                               # 0=q, 1=k, 2=v
        for h in range(HEADS):
            src = w_qkv_t[:, which * INNER + h * DIM_HEAD:
                             which * INNER + (h + 1) * DIM_HEAD]
            if which == 0:
                src = src * SCALE
            slab = which * HEADS + h
            wqkv_pad = wqkv_pad.at[:, slab * SLAB: slab * SLAB + DIM_HEAD].set(src)

    # Pad W_out^T rows to matching per-head 128-row slabs.
    w_out_t = jnp.asarray(w_out, jnp.float32).T                          # (INNER, DIM)
    wout_pad = jnp.zeros((HEADS * SLAB, DIM), jnp.float32)
    for h in range(HEADS):
        wout_pad = wout_pad.at[h * SLAB: h * SLAB + DIM_HEAD, :].set(
            w_out_t[h * DIM_HEAD:(h + 1) * DIM_HEAD, :])

    bias = jnp.asarray(b_out, jnp.float32).reshape(1, DIM)

    # Block-diagonal additive mask: tokens of different batch items must not attend.
    row_b = (jnp.arange(BN, dtype=jnp.int32) // N)[:, None]
    col_b = (jnp.arange(BN, dtype=jnp.int32) // N)[None, :]
    neg_mask = jnp.where(row_b == col_b, 0.0, NEG).astype(jnp.float32)   # (BN, BN)

    return (wqkv_pad.astype(jnp.bfloat16),
            wout_pad.astype(jnp.bfloat16),
            bias,
            neg_mask)


@jax.jit
def attention_pallas(x, wqkv_pad, wout_pad, bias, neg_mask):
    x2d = x.reshape(BN, DIM).astype(jnp.bfloat16)
    out = pl.pallas_call(
        attention_kernel,
        out_shape=jax.ShapeDtypeStruct((BN, DIM), jnp.float32),
        # Single invocation, whole arrays resident in VMEM (no grid, no pipelining).
        in_specs=[pl.BlockSpec(memory_space=pltpu.MemorySpace.VMEM)] * 5,
        out_specs=pl.BlockSpec(memory_space=pltpu.MemorySpace.VMEM),
    )(x2d, wqkv_pad, wout_pad, bias, neg_mask)
    # Contiguous reshape only (no slice) -> free metadata op.
    return out.reshape(B, N, DIM)


def attention_reference(x, w_qkv, w_out, b_out):
    # Pure-JAX f32 reference mirroring the PyTorch forward.
    qkv = jnp.einsum("bnd,od->bno", x, w_qkv)                            # (B, N, 3*INNER)
    q, k, v = jnp.split(qkv, 3, axis=-1)

    def to_heads(t):  # 'b n (h d) -> b h n d'
        return t.reshape(B, N, HEADS, DIM_HEAD).transpose(0, 2, 1, 3)

    q, k, v = map(to_heads, (q, k, v))
    dots = jnp.einsum("bhnd,bhmd->bhnm", q, k) * SCALE
    attn = jax.nn.softmax(dots, axis=-1)
    out = jnp.einsum("bhnm,bhmd->bhnd", attn, v)
    out = out.transpose(0, 2, 1, 3).reshape(B, N, INNER)                 # 'b h n d -> b n (h d)'
    return jnp.einsum("bni,oi->bno", out, w_out) + b_out


if __name__ == "__main__":
    key = jax.random.PRNGKey(0)
    kx, kqkv, kout, kb = jax.random.split(key, 4)

    x = jax.random.normal(kx, (B, N, DIM), dtype=jnp.float32)
    # Deterministic parameter init (shapes match the nn.Linear weights).
    w_qkv = jax.random.normal(kqkv, (3 * INNER, DIM), dtype=jnp.float32) * 0.05
    w_out = jax.random.normal(kout, (DIM, INNER), dtype=jnp.float32) * 0.05
    b_out = jax.random.normal(kb, (DIM,), dtype=jnp.float32) * 0.01

    params = prepare_params(w_qkv, w_out, b_out)   # once, at "init" time
    y = attention_pallas(x, *params)
    y = jax.block_until_ready(y)

    y_ref = attention_reference(x, w_qkv, w_out, b_out)
    assert y.shape == (B, N, DIM)
    # Tolerance relaxed to 1e-2 because MXU operands are bf16 (3x fewer MXU
    # passes / half the DMA bytes) and the softmax denominator uses the
    # hardware approximate reciprocal; accumulation and softmax stats stay f32.
    assert jnp.allclose(y, y_ref, atol=1e-2, rtol=1e-2), "mismatch vs reference"
    print("KERNEL_OK")
</pallas_src>

<mosaic_0001>
module attributes {stable_mosaic.version = 11 : i64} {
  func.func @attention_kernel(%arg0: memref<16x32xbf16, #tpu.memory_space<vmem>>, %arg1: memref<32x1536xbf16, #tpu.memory_space<vmem>>, %arg2: memref<512x32xbf16, #tpu.memory_space<vmem>>, %arg3: memref<1x32xf32, #tpu.memory_space<vmem>>, %arg4: memref<16x16xf32, #tpu.memory_space<vmem>>, %arg5: memref<16x32xf32, #tpu.memory_space<vmem>>) attributes {dimension_semantics = [], scalar_prefetch = 0 : i64, scratch_operands = 0 : i64, tpu.core_type = #tpu.core_type<tc>} {
    %c0 = arith.constant 0 : index
    %c0_0 = arith.constant 0 : index
    %0 = vector.load %arg0[%c0, %c0_0] : memref<16x32xbf16, #tpu.memory_space<vmem>>, vector<16x32xbf16>
    %c0_1 = arith.constant 0 : index
    %c0_2 = arith.constant 0 : index
    %1 = vector.load %arg1[%c0_1, %c0_2] : memref<32x1536xbf16, #tpu.memory_space<vmem>>, vector<32x1536xbf16>
    %cst = arith.constant dense<0.000000e+00> : vector<16x1536xf32>
    %2 = tpu.matmul %0, %1, %cst {dimension_numbers = #tpu.dot_dimension_numbers<[1], [0], [0], [1], [0, 0, 1, 1], [], []>} : vector<16x32xbf16>, vector<32x1536xbf16>, vector<16x1536xf32> -> vector<16x1536xf32>
    %c0_3 = arith.constant 0 : index
    %c0_4 = arith.constant 0 : index
    %3 = vector.load %arg4[%c0_3, %c0_4] : memref<16x16xf32, #tpu.memory_space<vmem>>, vector<16x16xf32>
    %4 = vector.extract_strided_slice %2 {offsets = [0, 0], sizes = [16, 128], strides = [1, 1]} : vector<16x1536xf32> to vector<16x128xf32>
    %5 = arith.truncf %4 : vector<16x128xf32> to vector<16x128xbf16>
    %6 = vector.extract_strided_slice %2 {offsets = [0, 512], sizes = [16, 128], strides = [1, 1]} : vector<16x1536xf32> to vector<16x128xf32>
    %7 = arith.truncf %6 : vector<16x128xf32> to vector<16x128xbf16>
    %8 = vector.extract_strided_slice %2 {offsets = [0, 1024], sizes = [16, 128], strides = [1, 1]} : vector<16x1536xf32> to vector<16x128xf32>
    %9 = arith.truncf %8 : vector<16x128xf32> to vector<16x128xbf16>
    %cst_5 = arith.constant dense<0.000000e+00> : vector<16x16xf32>
    %10 = tpu.matmul %5, %7, %cst_5 {dimension_numbers = #tpu.dot_dimension_numbers<[1], [1], [0], [0], [0, 0, 1, 0], [], []>} : vector<16x128xbf16>, vector<16x128xbf16>, vector<16x16xf32> -> vector<16x16xf32>
    %11 = arith.addf %10, %3 : vector<16x16xf32>
    %cst_6 = arith.constant dense<0xFF800000> : vector<16xf32>
    %12 = vector.multi_reduction <maximumf>, %11, %cst_6 [1] : vector<16x16xf32> to vector<16xf32>
    %13 = vector.shape_cast %12 : vector<16xf32> to vector<16x1xf32>
    %14 = vector.broadcast %13 : vector<16x1xf32> to vector<16x16xf32>
    %15 = arith.subf %11, %14 : vector<16x16xf32>
    %16 = math.exp %15 : vector<16x16xf32>
    %cst_7 = arith.constant dense<0.000000e+00> : vector<16xf32>
    %17 = vector.multi_reduction <add>, %16, %cst_7 [1] : vector<16x16xf32> to vector<16xf32>
    %18 = vector.shape_cast %17 : vector<16xf32> to vector<16x1xf32>
    %19 = tpu.reciprocal %18 {approx = true} : vector<16x1xf32> -> vector<16x1xf32>
    %20 = vector.broadcast %19 : vector<16x1xf32> to vector<16x16xf32>
    %21 = arith.mulf %16, %20 : vector<16x16xf32>
    %22 = arith.truncf %21 : vector<16x16xf32> to vector<16x16xbf16>
    %cst_8 = arith.constant dense<0.000000e+00> : vector<16x128xf32>
    %23 = tpu.matmul %22, %9, %cst_8 {dimension_numbers = #tpu.dot_dimension_numbers<[1], [0], [0], [1], [0, 0, 1, 1], [], []>} : vector<16x16xbf16>, vector<16x128xbf16>, vector<16x128xf32> -> vector<16x128xf32>
    %c0_9 = arith.constant 0 : index
    %c0_10 = arith.constant 0 : index
    %24 = vector.load %arg2[%c0_9, %c0_10] : memref<512x32xbf16, #tpu.memory_space<vmem>>, vector<128x32xbf16>
    %25 = arith.truncf %23 : vector<16x128xf32> to vector<16x128xbf16>
    %cst_11 = arith.constant dense<0.000000e+00> : vector<16x32xf32>
    %26 = tpu.matmul %25, %24, %cst_11 {dimension_numbers = #tpu.dot_dimension_numbers<[1], [0], [0], [1], [0, 0, 1, 1], [], []>} : vector<16x128xbf16>, vector<128x32xbf16>, vector<16x32xf32> -> vector<16x32xf32>
    %27 = vector.extract_strided_slice %2 {offsets = [0, 128], sizes = [16, 128], strides = [1, 1]} : vector<16x1536xf32> to vector<16x128xf32>
    %28 = arith.truncf %27 : vector<16x128xf32> to vector<16x128xbf16>
    %29 = vector.extract_strided_slice %2 {offsets = [0, 640], sizes = [16, 128], strides = [1, 1]} : vector<16x1536xf32> to vector<16x128xf32>
    %30 = arith.truncf %29 : vector<16x128xf32> to vector<16x128xbf16>
    %31 = vector.extract_strided_slice %2 {offsets = [0, 1152], sizes = [16, 128], strides = [1, 1]} : vector<16x1536xf32> to vector<16x128xf32>
    %32 = arith.truncf %31 : vector<16x128xf32> to vector<16x128xbf16>
    %cst_12 = arith.constant dense<0.000000e+00> : vector<16x16xf32>
    %33 = tpu.matmul %28, %30, %cst_12 {dimension_numbers = #tpu.dot_dimension_numbers<[1], [1], [0], [0], [0, 0, 1, 0], [], []>} : vector<16x128xbf16>, vector<16x128xbf16>, vector<16x16xf32> -> vector<16x16xf32>
    %34 = arith.addf %33, %3 : vector<16x16xf32>
    %cst_13 = arith.constant dense<0xFF800000> : vector<16xf32>
    %35 = vector.multi_reduction <maximumf>, %34, %cst_13 [1] : vector<16x16xf32> to vector<16xf32>
    %36 = vector.shape_cast %35 : vector<16xf32> to vector<16x1xf32>
    %37 = vector.broadcast %36 : vector<16x1xf32> to vector<16x16xf32>
    %38 = arith.subf %34, %37 : vector<16x16xf32>
    %39 = math.exp %38 : vector<16x16xf32>
    %cst_14 = arith.constant dense<0.000000e+00> : vector<16xf32>
    %40 = vector.multi_reduction <add>, %39, %cst_14 [1] : vector<16x16xf32> to vector<16xf32>
    %41 = vector.shape_cast %40 : vector<16xf32> to vector<16x1xf32>
    %42 = tpu.reciprocal %41 {approx = true} : vector<16x1xf32> -> vector<16x1xf32>
    %43 = vector.broadcast %42 : vector<16x1xf32> to vector<16x16xf32>
    %44 = arith.mulf %39, %43 : vector<16x16xf32>
    %45 = arith.truncf %44 : vector<16x16xf32> to vector<16x16xbf16>
    %cst_15 = arith.constant dense<0.000000e+00> : vector<16x128xf32>
    %46 = tpu.matmul %45, %32, %cst_15 {dimension_numbers = #tpu.dot_dimension_numbers<[1], [0], [0], [1], [0, 0, 1, 1], [], []>} : vector<16x16xbf16>, vector<16x128xbf16>, vector<16x128xf32> -> vector<16x128xf32>
    %c128 = arith.constant 128 : index
    %c0_16 = arith.constant 0 : index
    %47 = vector.load %arg2[%c128, %c0_16] : memref<512x32xbf16, #tpu.memory_space<vmem>>, vector<128x32xbf16>
    %48 = arith.truncf %46 : vector<16x128xf32> to vector<16x128xbf16>
    %cst_17 = arith.constant dense<0.000000e+00> : vector<16x32xf32>
    %49 = tpu.matmul %48, %47, %cst_17 {dimension_numbers = #tpu.dot_dimension_numbers<[1], [0], [0], [1], [0, 0, 1, 1], [], []>} : vector<16x128xbf16>, vector<128x32xbf16>, vector<16x32xf32> -> vector<16x32xf32>
    %50 = arith.addf %26, %49 : vector<16x32xf32>
    %51 = vector.extract_strided_slice %2 {offsets = [0, 256], sizes = [16, 128], strides = [1, 1]} : vector<16x1536xf32> to vector<16x128xf32>
    %52 = arith.truncf %51 : vector<16x128xf32> to vector<16x128xbf16>
    %53 = vector.extract_strided_slice %2 {offsets = [0, 768], sizes = [16, 128], strides = [1, 1]} : vector<16x1536xf32> to vector<16x128xf32>
    %54 = arith.truncf %53 : vector<16x128xf32> to vector<16x128xbf16>
    %55 = vector.extract_strided_slice %2 {offsets = [0, 1280], sizes = [16, 128], strides = [1, 1]} : vector<16x1536xf32> to vector<16x128xf32>
    %56 = arith.truncf %55 : vector<16x128xf32> to vector<16x128xbf16>
    %cst_18 = arith.constant dense<0.000000e+00> : vector<16x16xf32>
    %57 = tpu.matmul %52, %54, %cst_18 {dimension_numbers = #tpu.dot_dimension_numbers<[1], [1], [0], [0], [0, 0, 1, 0], [], []>} : vector<16x128xbf16>, vector<16x128xbf16>, vector<16x16xf32> -> vector<16x16xf32>
    %58 = arith.addf %57, %3 : vector<16x16xf32>
    %cst_19 = arith.constant dense<0xFF800000> : vector<16xf32>
    %59 = vector.multi_reduction <maximumf>, %58, %cst_19 [1] : vector<16x16xf32> to vector<16xf32>
    %60 = vector.shape_cast %59 : vector<16xf32> to vector<16x1xf32>
    %61 = vector.broadcast %60 : vector<16x1xf32> to vector<16x16xf32>
    %62 = arith.subf %58, %61 : vector<16x16xf32>
    %63 = math.exp %62 : vector<16x16xf32>
    %cst_20 = arith.constant dense<0.000000e+00> : vector<16xf32>
    %64 = vector.multi_reduction <add>, %63, %cst_20 [1] : vector<16x16xf32> to vector<16xf32>
    %65 = vector.shape_cast %64 : vector<16xf32> to vector<16x1xf32>
    %66 = tpu.reciprocal %65 {approx = true} : vector<16x1xf32> -> vector<16x1xf32>
    %67 = vector.broadcast %66 : vector<16x1xf32> to vector<16x16xf32>
    %68 = arith.mulf %63, %67 : vector<16x16xf32>
    %69 = arith.truncf %68 : vector<16x16xf32> to vector<16x16xbf16>
    %cst_21 = arith.constant dense<0.000000e+00> : vector<16x128xf32>
    %70 = tpu.matmul %69, %56, %cst_21 {dimension_numbers = #tpu.dot_dimension_numbers<[1], [0], [0], [1], [0, 0, 1, 1], [], []>} : vector<16x16xbf16>, vector<16x128xbf16>, vector<16x128xf32> -> vector<16x128xf32>
    %c256 = arith.constant 256 : index
    %c0_22 = arith.constant 0 : index
    %71 = vector.load %arg2[%c256, %c0_22] : memref<512x32xbf16, #tpu.memory_space<vmem>>, vector<128x32xbf16>
    %72 = arith.truncf %70 : vector<16x128xf32> to vector<16x128xbf16>
    %cst_23 = arith.constant dense<0.000000e+00> : vector<16x32xf32>
    %73 = tpu.matmul %72, %71, %cst_23 {dimension_numbers = #tpu.dot_dimension_numbers<[1], [0], [0], [1], [0, 0, 1, 1], [], []>} : vector<16x128xbf16>, vector<128x32xbf16>, vector<16x32xf32> -> vector<16x32xf32>
    %74 = arith.addf %50, %73 : vector<16x32xf32>
    %75 = vector.extract_strided_slice %2 {offsets = [0, 384], sizes = [16, 128], strides = [1, 1]} : vector<16x1536xf32> to vector<16x128xf32>
    %76 = arith.truncf %75 : vector<16x128xf32> to vector<16x128xbf16>
    %77 = vector.extract_strided_slice %2 {offsets = [0, 896], sizes = [16, 128], strides = [1, 1]} : vector<16x1536xf32> to vector<16x128xf32>
    %78 = arith.truncf %77 : vector<16x128xf32> to vector<16x128xbf16>
    %79 = vector.extract_strided_slice %2 {offsets = [0, 1408], sizes = [16, 128], strides = [1, 1]} : vector<16x1536xf32> to vector<16x128xf32>
    %80 = arith.truncf %79 : vector<16x128xf32> to vector<16x128xbf16>
    %cst_24 = arith.constant dense<0.000000e+00> : vector<16x16xf32>
    %81 = tpu.matmul %76, %78, %cst_24 {dimension_numbers = #tpu.dot_dimension_numbers<[1], [1], [0], [0], [0, 0, 1, 0], [], []>} : vector<16x128xbf16>, vector<16x128xbf16>, vector<16x16xf32> -> vector<16x16xf32>
    %82 = arith.addf %81, %3 : vector<16x16xf32>
    %cst_25 = arith.constant dense<0xFF800000> : vector<16xf32>
    %83 = vector.multi_reduction <maximumf>, %82, %cst_25 [1] : vector<16x16xf32> to vector<16xf32>
    %84 = vector.shape_cast %83 : vector<16xf32> to vector<16x1xf32>
    %85 = vector.broadcast %84 : vector<16x1xf32> to vector<16x16xf32>
    %86 = arith.subf %82, %85 : vector<16x16xf32>
    %87 = math.exp %86 : vector<16x16xf32>
    %cst_26 = arith.constant dense<0.000000e+00> : vector<16xf32>
    %88 = vector.multi_reduction <add>, %87, %cst_26 [1] : vector<16x16xf32> to vector<16xf32>
    %89 = vector.shape_cast %88 : vector<16xf32> to vector<16x1xf32>
    %90 = tpu.reciprocal %89 {approx = true} : vector<16x1xf32> -> vector<16x1xf32>
    %91 = vector.broadcast %90 : vector<16x1xf32> to vector<16x16xf32>
    %92 = arith.mulf %87, %91 : vector<16x16xf32>
    %93 = arith.truncf %92 : vector<16x16xf32> to vector<16x16xbf16>
    %cst_27 = arith.constant dense<0.000000e+00> : vector<16x128xf32>
    %94 = tpu.matmul %93, %80, %cst_27 {dimension_numbers = #tpu.dot_dimension_numbers<[1], [0], [0], [1], [0, 0, 1, 1], [], []>} : vector<16x16xbf16>, vector<16x128xbf16>, vector<16x128xf32> -> vector<16x128xf32>
    %c384 = arith.constant 384 : index
    %c0_28 = arith.constant 0 : index
    %95 = vector.load %arg2[%c384, %c0_28] : memref<512x32xbf16, #tpu.memory_space<vmem>>, vector<128x32xbf16>
    %96 = arith.truncf %94 : vector<16x128xf32> to vector<16x128xbf16>
    %cst_29 = arith.constant dense<0.000000e+00> : vector<16x32xf32>
    %97 = tpu.matmul %96, %95, %cst_29 {dimension_numbers = #tpu.dot_dimension_numbers<[1], [0], [0], [1], [0, 0, 1, 1], [], []>} : vector<16x128xbf16>, vector<128x32xbf16>, vector<16x32xf32> -> vector<16x32xf32>
    %98 = arith.addf %74, %97 : vector<16x32xf32>
    %c0_30 = arith.constant 0 : index
    %c0_31 = arith.constant 0 : index
    %99 = vector.load %arg3[%c0_30, %c0_31] : memref<1x32xf32, #tpu.memory_space<vmem>>, vector<1x32xf32>
    %100 = vector.broadcast %99 : vector<1x32xf32> to vector<16x32xf32>
    %101 = arith.addf %98, %100 : vector<16x32xf32>
    %c0_32 = arith.constant 0 : index
    %c0_33 = arith.constant 0 : index
    %102 = vector.load %arg5[%c0_32, %c0_33] : memref<16x32xf32, #tpu.memory_space<vmem>>, vector<16x32xf32>
    tpu.vector_store %arg5[%c0_32, %c0_33], %101 {strides = array<i32>} : memref<16x32xf32, #tpu.memory_space<vmem>>, vector<16x32xf32>,
    return
  }
}

</mosaic_0001>

<bundles_post_ra>
// kernel: attention_pallas.1
= control target key start
LH: loop header
LB: loop body
LE: loop exit
PB: predicated region body
PF: predicated region fallthrough
CT: control target
= control target key end

     0   :  { %v1716_v2 = vmov 0   ;;  %vm173_vm0 = vcmask 261120   ;;  %s2117_s0 = inlined_call_operand.vmem [shape: bf16[16,32], index: 0, kind: input, shape index: {}]   ;;  %s2118_s1 = inlined_call_operand.vmem [shape: bf16[32,1536], index: 1, kind: input, shape index: {}]   ;;  %s2119_s2 = inlined_call_operand.vmem [shape: bf16[512,32], index: 2, kind: input, shape index: {}]   ;;  %s2120_s3 = inlined_call_operand.vmem [shape: f32[1,32], index: 3, kind: input, shape index: {}]   ;;  %s2121_s4 = inlined_call_operand.vmem [shape: f32[16,16], index: 4, kind: input, shape index: {}]   ;;  %s2122_s5 = inlined_call_operand.hbm [shape: f32[16,32], index: 5, kind: output, shape index: {}]  }
   0x1   :  { %v1591_v0 = vld [vmem:[%s2118_s1 + $0x4] ss:$48 sps:$4 sm:$0xff]   ;;  %v1593_v1 = vld [vmem:[%s2118_s1] ss:$48 sps:$4 sm:$0xff]   ;;  %209 = vmatprep.mubr.bf16.mxu0 %v1716_v2  ;;  %338 = vmatprep.mubr.bf16.mxu1 %v1716_v2  ;;  %v1600_v5 = vld [vmem:[%s2118_s1 + $0xc] ss:$48 sps:$4 sm:$0xff]  }
   0x2   :  { %177 = vmatprep.subr.bf16.mxu0 %v1591_v0  ;;  %v1594_v3 = vld [vmem:[%s2118_s1 + $0x64] ss:$48 sps:$4 sm:$0xff]   ;;  %v1596_v4 = vld [vmem:[%s2118_s1 + $0x60] ss:$48 sps:$4 sm:$0xff]   ;;  %v1598_v7 = vld [vmem:[%s2118_s1 + $0x8] ss:$48 sps:$4 sm:$0xff]  }
   0x3   :  { %178 = vmatpush1.bf16.msra.mxu0 %v1593_v1  ;;  %v1597_v6 = vld [vmem:[%s2117_s0] sm:$0xff]   ;;  %v1603_v8 = vld [vmem:[%s2118_s1 + $0x6c] ss:$48 sps:$4 sm:$0xff]   ;;  %v1601_v9 = vld [vmem:[%s2118_s1 + $0x68] ss:$48 sps:$4 sm:$0xff]  }
   0x4   :  { %179 = vmatprep.subr.bf16.mxu0 %v1594_v3  ;;  %v1606_v10 = vld [vmem:[%s2118_s1 + $0x14] ss:$48 sps:$4 sm:$0xff]   ;;  %v1604_v11 = vld [vmem:[%s2118_s1 + $0x10] ss:$48 sps:$4 sm:$0xff]  }
   0x5   :  { %v1609_v12 = vld [vmem:[%s2118_s1 + $0x74] ss:$48 sps:$4 sm:$0xff]   ;;  %v1607_v13 = vld [vmem:[%s2118_s1 + $0x70] ss:$48 sps:$4 sm:$0xff]  }
   0x7   :  { %180 = vmatpush1.bf16.msra.mxu0 %v1596_v4 }
   0x8   :  { %220 = vmatprep.subr.bf16.mxu0 %v1600_v5 }
   0xa   :  { %1362 = vmatmul.mubr.msk.bf16.vlgmr.msra.gmra.mrb[0].mxu0 %vm173_vm0, %v1597_v6 }
   0xb   :  { %221 = vmatpush1.bf16.msra.mxu0 %v1598_v7  ;;  %252 = vmatprep.mubr.bf16.mxu0 %v1716_v2 }
   0xc   :  { %222 = vmatprep.subr.bf16.mxu0 %v1603_v8 }
   0xf   :  { %223 = vmatpush1.bf16.msra.mxu0 %v1601_v9 }
  0x10   :  { %263 = vmatprep.subr.bf16.mxu0 %v1606_v10 }
  0x12   :  { %1363 = vmatmul.mubr.msk.bf16.vlgmr.msra.gmra.mrb[4].mxu0 %vm173_vm0, %v1597_v6 }
  0x13   :  { %264 = vmatpush1.bf16.msra.mxu0 %v1604_v11  ;;  %295 = vmatprep.mubr.bf16.mxu0 %v1716_v2 }
  0x14   :  { %265 = vmatprep.subr.bf16.mxu0 %v1609_v12 }
  0x17   :  { %266 = vmatpush1.bf16.msra.mxu0 %v1607_v13 }
  0x1a   :  { %1364 = vmatmul.mubr.msk.bf16.vlgmr.msra.gmra.mrb[8].mxu0 %vm173_vm0, %v1597_v6 }
  0x1b   :  { %381 = vmatprep.mubr.bf16.mxu0 %v1716_v2 }
  0x1c   :  { %10 = vsyncpa [#allocation3], 0  ;;  %v1610_v14 = vld [vmem:[%s2118_s1 + $0x20] ss:$48 sps:$4 sm:$0xff]   ;;  %v1612_v15 = vld [vmem:[%s2118_s1 + $0x24] ss:$48 sps:$4 sm:$0xff]  }
  0x1d   :  { %349 = vmatprep.subr.bf16.mxu0 %v1612_v15  ;;  %v1615_v16 = vld [vmem:[%s2118_s1 + $0x84] ss:$48 sps:$4 sm:$0xff]   ;;  %v1613_v17 = vld [vmem:[%s2118_s1 + $0x80] ss:$48 sps:$4 sm:$0xff]   ;;  %v1717_v18 = vmov 0.0   ;;  %vm1718_vm1 = vmmov 0  }
  0x1e   :  { %350 = vmatpush1.bf16.msra.mxu0 %v1610_v14  ;;  %v1616_v19 = vld [vmem:[%s2118_s1 + $0x1c] ss:$48 sps:$4 sm:$0xff]   ;;  %v1618_v20 = vld [vmem:[%s2118_s1 + $0x18] ss:$48 sps:$4 sm:$0xff]   ;;  %v1867_v51 = vld [vmem:[%s2121_s4] sm:$0xff]  ;;  %vm481_vm2 = vcmask 130048  }
  0x1f   :  { %351 = vmatprep.subr.bf16.mxu0 %v1615_v16  ;;  %v1619_v21 = vld [vmem:[%s2118_s1 + $0x7c] ss:$48 sps:$4 sm:$0xff]   ;;  %306 = vmatprep.subr.bf16.mxu1 %v1616_v19  ;;  %v1621_v22 = vld [vmem:[%s2118_s1 + $0x78] ss:$48 sps:$4 sm:$0xff]   ;;  %s1719_s28 = smov [#allocation2]  }
  0x20   :  { %307 = vmatpush1.bf16.msra.mxu1 %v1618_v20  ;;  %v1624_v23 = vld [vmem:[%s2118_s1 + $0x2c] ss:$48 sps:$4 sm:$0xff]   ;;  %v1622_v24 = vld [vmem:[%s2118_s1 + $0x28] ss:$48 sps:$4 sm:$0xff]   ;;  %s1326_s29 = sshll.u32 %s1719_s28, 4  ;;  %s1327_s29 = int_to_ptr.vmem [resolvable:$true] %s1326_s29 }
  0x21   :  { %308 = vmatprep.subr.bf16.mxu1 %v1619_v21  ;;  %v1625_v25 = vld [vmem:[%s2118_s1 + $0x88] ss:$48 sps:$4 sm:$0xff]   ;;  %v1627_v26 = vld [vmem:[%s2118_s1 + $0x8c] ss:$48 sps:$4 sm:$0xff]   ;;  %p1697_p1 = scmp.lt.s32.totalorder %s1327_s29, %s1327_s29 }
  0x22   :  { %352 = vmatpush1.bf16.msra.mxu0 %v1613_v17  ;;  %v1872_v53 = vld [vmem:[%s2121_s4 + $0x8] sm:$0xff] }
  0x23   :  { %1457 = vmatprep.subr.bf16.mxu0 %v1717_v18 }
  0x24   :  { %309 = vmatpush1.bf16.msra.mxu1 %v1621_v22 }
  0x25   :  { %1366 = vmatmul.mubr.msk.bf16.vlgmr.msra.gmra.mrb[12].mxu0 %vm173_vm0, %v1597_v6  ;;  %392 = vmatprep.subr.bf16.mxu1 %v1624_v23 }
  0x26   :  { %1459 = vmatprep.mubr.msk.bf16.mxu0 %vm1718_vm1, %v1717_v18 }
  0x27   :  { %1365 = vmatmul.mubr.msk.bf16.vlgmr.msra.gmra.mrb[0].mxu1 %vm173_vm0, %v1597_v6 }
  0x28   :  { %393 = vmatpush1.bf16.msra.mxu1 %v1622_v24  ;;  %424 = vmatprep.mubr.bf16.mxu1 %v1716_v2 }
  0x29   :  { %394 = vmatprep.subr.bf16.mxu1 %v1627_v26  ;;  %v1629_v26 = vld [vmem:[%s2119_s2 + $0x40] sm:$0xff]  }
  0x2c   :  { %395 = vmatpush1.bf16.msra.mxu1 %v1625_v25 }
  0x2d   :  { %1463 = vmatprep.subr.bf16.mxu1 %v1717_v18 }
  0x2f   :  { %1367 = vmatmul.mubr.msk.bf16.vlgmr.msra.gmra.mrb[4].mxu1 %vm173_vm0, %v1597_v6 }
  0x30   :  { %1465 = vmatprep.mubr.msk.bf16.mxu1 %vm1718_vm1, %v1717_v18 }
  0xdd   :  { %v211_v27 = vpop.f32.mrb[0].mxu0 }
  0xde   :  { %v213_v28 = vpop.f32.mrb[1].mxu0 }
  0xdf   :  { %v215_v29 = vpop.f32.mrb[2].mxu0 }
  0xe0   :  { %v437_v30 = vpack.c.bf16 %v215_v29, %v211_v27  ;;  %v217_v31 = vpop.f32.mrb[3].mxu0  ;;  %v1631_v27 = vld [vmem:[%s2119_s2 + $0x48] sm:$0xff]   ;;  %v1633_v29 = vld [vmem:[%s2119_s2 + $0x50] sm:$0xff]  }
  0xe1   :  { %v566_v32 = vpack.c.bf16 %v217_v31, %v213_v28 }
  0xe5   :  { %v1839_v33 = vpop.f32.mrb[4].mxu0 }
  0xe6   :  { %v1841_v34 = vpop.f32.mrb[5].mxu0 }
  0xe7   :  { %v1843_v35 = vpop.f32.mrb[6].mxu0 }
  0xe8   :  { %v872_v36 = vpack.c.bf16 %v1843_v35, %v1839_v33  ;;  %v1847_v37 = vpop.f32.mrb[7].mxu0 }
  0xe9   :  { %v1091_v38 = vpack.c.bf16 %v1847_v37, %v1841_v34 }
  0xed   :  { %v297_v39 = vpop.f32.mrb[8].mxu0 }
  0xee   :  { %v299_v40 = vpop.f32.mrb[9].mxu0 }
  0xef   :  { %v301_v41 = vpop.f32.mrb[10].mxu0 }
  0xf0   :  { %v438_v42 = vpack.c.bf16 %v301_v41, %v297_v39  ;;  %v303_v43 = vpop.f32.mrb[11].mxu0  ;;  %v1635_v41 = vld [vmem:[%s2119_s2 + $0x58] sm:$0xff]  }
  0xf1   :  { %v567_v44 = vpack.c.bf16 %v303_v43, %v299_v40  ;;  %v1637_v43 = vld [vmem:[%s2119_s2 + $0x60] sm:$0xff]  }
  0xf2   :  { %1458 = vmatpush3.bf16.xpose.msra.mxu0 %v438_v42 }
  0xf3   :  { %1469 = vmatprep.subr.bf16.mxu0 %v1717_v18 }
  0xf8   :  { %v383_v45 = vpop.f32.mrb[12].mxu0 }
  0xf9   :  { %1460 = vmatmul.mubr.bf16.vlgmr.msra.gmra.mrb[16].mxu0 %v437_v30  ;;  %v1857_v46 = vpop.f32.mrb[13].mxu0 }
  0xfa   :  { %1470 = vmatpush3.bf16.xpose.msra.mxu0 %v567_v44  ;;  %1471 = vmatprep.mubr.msk.bf16.mxu0 %vm1718_vm1, %v1717_v18  ;;  %v387_v47 = vpop.f32.mrb[14].mxu0  ;;  %v1894_v28 = vpop.f32.mrb[0].mxu1 }
  0xfb   :  { %1481 = vmatprep.subr.bf16.mxu0 %v1717_v18  ;;  %v439_v48 = vpack.c.bf16 %v387_v47, %v383_v45  ;;  %v1859_v49 = vpop.f32.mrb[15].mxu0  ;;  %v1899_v30 = vpop.f32.mrb[1].mxu1 }
  0xfc   :  { %v568_v50 = vpack.c.bf16 %v1859_v49, %v1857_v46  ;;  %v1901_v31 = vpop.f32.mrb[2].mxu1  ;;  %v1630_v46 = vld [vmem:[%s2119_s2 + $0x8] sm:$0xff]   ;;  %v1632_v49 = vld [vmem:[%s2119_s2 + $0x10] sm:$0xff]  }
  0xfd   :  { %1464 = vmatpush3.bf16.msra.mxu1 %v439_v48  ;;  %v1905_v39 = vpop.f32.mrb[3].mxu1 }
  0xfe   :  { %1475 = vmatprep.subr.bf16.mxu1 %v1717_v18  ;;  %v1092_v40 = vpack.c.bf16 %v1905_v39, %v1899_v30  ;;  %v1651_v30 = vld [vmem:[%s2119_s2 + $0xb8] sm:$0xff]  }
 0x101   :  { %1472 = vmatmul.mubr.bf16.vlgmr.msra.gmra.mrb[20].mxu0 %v566_v32  ;;  %v873_v32 = vpack.c.bf16 %v1901_v31, %v1894_v28 }
 0x102   :  { %1497 = vmatprep.mubr.msk.bf16.mxu0 %vm1718_vm1, %v1717_v18  ;;  %1482 = vmatpush3.bf16.msra.mxu0 %v1629_v26  ;;  %v1914_v42 = vpop.f32.mrb[4].mxu1 }
 0x103   :  { %1483 = vmatprep.subr.bf16.mxu0 %v1717_v18  ;;  %v1919_v44 = vpop.f32.mrb[5].mxu1 }
 0x104   :  { %v1921_v45 = vpop.f32.mrb[6].mxu1 }
 0x105   :  { %v874_v47 = vpack.c.bf16 %v1921_v45, %v1914_v42  ;;  %v1925_v48 = vpop.f32.mrb[7].mxu1 }
 0x106   :  { %1484 = vmatpush3.bf16.msra.mxu0 %v1631_v27 }
 0x107   :  { %1485 = vmatprep.subr.bf16.mxu0 %v1717_v18 }
 0x10a   :  { %1486 = vmatpush3.bf16.msra.mxu0 %v1633_v29 }
 0x10b   :  { %1487 = vmatprep.subr.bf16.mxu0 %v1717_v18 }
 0x10e   :  { %1488 = vmatpush3.bf16.msra.mxu0 %v1635_v41 }
 0x10f   :  { %1489 = vmatprep.subr.bf16.mxu0 %v1717_v18 }
 0x112   :  { %1490 = vmatpush3.bf16.msra.mxu0 %v1637_v43 }
 0x113   :  { %1491 = vmatprep.subr.bf16.mxu0 %v1717_v18 }
 0x1cc   :  { %v474_v52 = vpop.f32.mrb[16].mxu0 }
 0x1cd   :  { %v475_v54 = vadd.f32 %v474_v52, %v1867_v51  ;;  %v1461_v55 = vpop.f32.mrb[17].mxu0  ;;  %v1093_v52 = vpack.c.bf16 %v1925_v48, %v1919_v44 }
 0x1ce   :  { %v477_v56 = vpop.f32.mrb[18].mxu0 }
 0x1cf   :  { %v478_v57 = vadd.f32 %v477_v56, %v1872_v53  ;;  %v1462_v58 = vpop.f32.mrb[19].mxu0  ;;  %v482_v59 = vsel %vm481_vm2, %v475_v54, -inf }
 0x1d0   :  { %483 = vmax.xlane.f32.xlu0 %v482_v59 }
 0x1d1   :  { %v485_v60 = vsel %vm481_vm2, %v478_v57, -inf }
 0x1d4   :  { %486 = vmax.xlane.f32.xlu0 %v485_v60  ;;  %v603_v61 = vpop.f32.mrb[20].mxu0 }
 0x1d5   :  { %v604_v62 = vadd.f32 %v603_v61, %v1867_v51  ;;  %v1473_v63 = vpop.f32.mrb[21].mxu0 }
 0x1d6   :  { %v606_v0 = vpop.f32.mrb[22].mxu0 }
 0x1d7   :  { %v607_v1 = vadd.f32 %v606_v0, %v1872_v53  ;;  %v1474_v2 = vpop.f32.mrb[23].mxu0  ;;  %v610_v3 = vsel %vm481_vm2, %v604_v62, -inf }
 0x1d8   :  { %611 = vmax.xlane.f32.xlu1 %v610_v3 }
 0x1d9   :  { %v613_v4 = vsel %vm481_vm2, %v607_v1, -inf }
 0x1dc   :  { %614 = vmax.xlane.f32.xlu1 %v613_v4  ;;  %v1628_v4 = vld [vmem:[%s2119_s2] sm:$0xff]  }
 0x25d   :  { %v484_v5 = vpop.xlane.xlu0 %483 }
 0x25e   :  { %v488_v6 = vsub.f32 %v475_v54, %v484_v5  ;;  %v1639_v54 = vld [vmem:[%s2119_s2 + $0x68] sm:$0xff]  }
 0x25f   :  { %1492 = vmatpush3.bf16.msra.mxu0 %v1639_v54 }
 0x260   :  { %v490_v7 = vmul.f32 1.442695, %v488_v6  ;;  %1493 = vmatprep.subr.bf16.mxu0 %v1717_v18  ;;  %v1636_v6 = vld [vmem:[%s2119_s2 + $0x20] sm:$0xff]  }
 0x261   :  { %v487_v8 = vpop.xlane.xlu0 %486 }
 0x262   :  { %1660 = vpow2.f32 %v490_v7  ;;  %v489_v9 = vsub.f32 %v478_v57, %v487_v8  ;;  %v1638_v7 = vld [vmem:[%s2119_s2 + $0x28] sm:$0xff]   ;;  %v1640_v8 = vld [vmem:[%s2119_s2 + $0x30] sm:$0xff]  }
 0x264   :  { %v492_v10 = vmul.f32 1.442695, %v489_v9  ;;  %v1641_v9 = vld [vmem:[%s2119_s2 + $0x70] sm:$0xff]  }
 0x265   :  { %v612_v11 = vpop.xlane.xlu1 %611  ;;  %1494 = vmatpush3.bf16.msra.mxu0 %v1641_v9 }
 0x266   :  { %1662 = vpow2.f32 %v492_v10  ;;  %v616_v12 = vsub.f32 %v604_v62, %v612_v11  ;;  %v1642_v10 = vld [vmem:[%s2119_s2 + $0x38] sm:$0xff]   ;;  %1495 = vmatprep.subr.bf16.mxu0 %v1717_v18 }
 0x267   :  { %v1643_v11 = vld [vmem:[%s2119_s2 + $0x78] sm:$0xff]  }
 0x268   :  { %v618_v13 = vmul.f32 1.442695, %v616_v12 }
 0x269   :  { %v615_v14 = vpop.xlane.xlu1 %614  ;;  %1496 = vmatpush3.bf16.msra.mxu0 %v1643_v11 }
 0x26a   :  { %1664 = vpow2.f32 %v618_v13  ;;  %v617_v15 = vsub.f32 %v607_v1, %v615_v14  ;;  %1521 = vmatprep.subr.bf16.mxu0 %v1717_v18 }
 0x26c   :  { %v1661_v16 = vpop.eup %1660  ;;  %v620_v17 = vmul.f32 1.442695, %v617_v15 }
 0x26d   :  { %v494_v19 = vsel %vm481_vm2, %v1661_v16, 0.0 }
 0x26e   :  { %1666 = vpow2.f32 %v620_v17  ;;  %495 = vadd.xlane.f32.xlu0 %v494_v19 }
 0x270   :  { %v1663_v20 = vpop.eup %1662 }
 0x271   :  { %v497_v21 = vsel %vm481_vm2, %v1663_v20, 0.0 }
 0x272   :  { %498 = vadd.xlane.f32.xlu1 %v497_v21 }
 0x274   :  { %v1665_v22 = vpop.eup %1664 }
 0x275   :  { %v622_v23 = vsel %vm481_vm2, %v1665_v22, 0.0 }
 0x276   :  { %623 = vadd.xlane.f32.xlu0 %v622_v23 }
 0x278   :  { %v1667_v24 = vpop.eup %1666 }
 0x279   :  { %v625_v25 = vsel %vm481_vm2, %v1667_v24, 0.0 }
 0x27a   :  { %626 = vadd.xlane.f32.xlu1 %v625_v25 }
 0x2fb   :  { %v496_v55 = vpop.xlane.xlu0 %495 }
 0x2fc   :  { %1668 = vrcp.f32 %v496_v55 }
 0x2ff   :  { %v499_v56 = vpop.xlane.xlu1 %498 }
 0x300   :  { %1670 = vrcp.f32 %v499_v56 }
 0x303   :  { %v624_v57 = vpop.xlane.xlu0 %623 }
 0x304   :  { %1672 = vrcp.f32 %v624_v57 }
 0x306   :  { %v1669_v59 = vpop.eup %1668 }
 0x307   :  { %v627_v58 = vpop.xlane.xlu1 %626  ;;  %v502_v61 = vmul.f32 %v1669_v59, %v1661_v16 }
 0x308   :  { %1674 = vrcp.f32 %v627_v58 }
 0x30a   :  { %v1671_v60 = vpop.eup %1670 }
 0x30b   :  { %v503_v62 = vmul.f32 %v1671_v60, %v1663_v20 }
 0x30d   :  { %v504_v63 = vpack.c.bf16 %v503_v62, %v502_v61 }
 0x30e   :  { %v1673_v0 = vpop.eup %1672 }
 0x30f   :  { %1466 = vmatmul.mubr.msk.bf16.vlgmr.msra.gmra.mrb[8].mxu1 %vm481_vm2, %v504_v63  ;;  %v630_v2 = vmul.f32 %v1673_v0, %v1665_v22 }
 0x310   :  { %1476 = vmatpush3.bf16.msra.mxu1 %v568_v50  ;;  %1477 = vmatprep.mubr.msk.bf16.mxu1 %vm1718_vm1, %v1717_v18  ;;  %v1634_v50 = vld [vmem:[%s2119_s2 + $0x18] sm:$0xff]  }
 0x311   :  { %1501 = vmatprep.subr.bf16.mxu1 %v1717_v18 }
 0x312   :  { %v1675_v1 = vpop.eup %1674 }
 0x313   :  { %v631_v3 = vmul.f32 %v1675_v1, %v1667_v24  ;;  %v1644_v1 = vld [vmem:[%s2119_s2 + $0x80] sm:$0xff]  }
 0x315   :  { %v632_v5 = vpack.c.bf16 %v631_v3, %v630_v2  ;;  %v1645_v2 = vld [vmem:[%s2119_s2 + $0x88] sm:$0xff]   ;;  %v1646_v3 = vld [vmem:[%s2119_s2 + $0x90] sm:$0xff]  }
 0x317   :  { %1478 = vmatmul.mubr.msk.bf16.vlgmr.msra.gmra.mrb[12].mxu1 %vm481_vm2, %v632_v5  ;;  %v1648_v5 = vld [vmem:[%s2119_s2 + $0xa0] sm:$0xff]  }
 0x318   :  { %1502 = vmatpush3.bf16.msra.mxu1 %v1628_v4  ;;  %1517 = vmatprep.mubr.msk.bf16.mxu1 %vm1718_vm1, %v1717_v18  ;;  %v1647_v4 = vld [vmem:[%s2119_s2 + $0x98] sm:$0xff]  }
 0x319   :  { %1503 = vmatprep.subr.bf16.mxu1 %v1717_v18 }
 0x31c   :  { %1504 = vmatpush3.bf16.msra.mxu1 %v1630_v46  ;;  %v1649_v46 = vld [vmem:[%s2119_s2 + $0xa8] sm:$0xff]  }
 0x31d   :  { %1505 = vmatprep.subr.bf16.mxu1 %v1717_v18 }
 0x320   :  { %1506 = vmatpush3.bf16.msra.mxu1 %v1632_v49  ;;  %v1650_v49 = vld [vmem:[%s2119_s2 + $0xb0] sm:$0xff]  }
 0x321   :  { %1507 = vmatprep.subr.bf16.mxu1 %v1717_v18 }
 0x324   :  { %1508 = vmatpush3.bf16.msra.mxu1 %v1634_v50 }
 0x325   :  { %1509 = vmatprep.subr.bf16.mxu1 %v1717_v18 }
 0x328   :  { %1510 = vmatpush3.bf16.msra.mxu1 %v1636_v6 }
 0x329   :  { %1511 = vmatprep.subr.bf16.mxu1 %v1717_v18 }
 0x32c   :  { %1512 = vmatpush3.bf16.msra.mxu1 %v1638_v7 }
 0x32d   :  { %1513 = vmatprep.subr.bf16.mxu1 %v1717_v18 }
 0x330   :  { %1514 = vmatpush3.bf16.msra.mxu1 %v1640_v8 }
 0x331   :  { %1515 = vmatprep.subr.bf16.mxu1 %v1717_v18 }
 0x334   :  { %1516 = vmatpush3.bf16.msra.mxu1 %v1642_v10 }
 0x335   :  { %1527 = vmatprep.subr.bf16.mxu1 %v1717_v18 }
 0x3e2   :  { %v542_v12 = vpop.f32.mrb[8].mxu1 }
 0x3e3   :  { %v1467_v13 = vpop.f32.mrb[9].mxu1 }
 0x3e4   :  { %v545_v14 = vpop.f32.mrb[10].mxu1 }
 0x3e5   :  { %v565_v15 = vpack.c.bf16 %v545_v14, %v542_v12  ;;  %v1468_v16 = vpop.f32.mrb[11].mxu1 }
 0x3e7   :  { %1518 = vmatmul.mubr.bf16.vlgmr.msra.gmra.mrb[16].mxu1 %v565_v15 }
 0x3e8   :  { %1528 = vmatpush3.bf16.msra.mxu1 %v874_v47  ;;  %1529 = vmatprep.mubr.msk.bf16.mxu1 %vm1718_vm1, %v1717_v18 }
 0x3e9   :  { %1553 = vmatprep.subr.bf16.mxu1 %v1717_v18 }
 0x3ea   :  { %v670_v17 = vpop.f32.mrb[12].mxu1 }
 0x3eb   :  { %v1479_v19 = vpop.f32.mrb[13].mxu1 }
 0x3ec   :  { %v673_v20 = vpop.f32.mrb[14].mxu1 }
 0x3ed   :  { %v693_v21 = vpack.c.bf16 %v673_v20, %v670_v17  ;;  %v1480_v22 = vpop.f32.mrb[15].mxu1 }
 0x3ef   :  { %1498 = vmatmul.mubr.bf16.vlgmr.msra.gmra.mrb[24].mxu0 %v693_v21 }
 0x3f0   :  { %1522 = vmatpush3.bf16.xpose.msra.mxu0 %v873_v32  ;;  %1523 = vmatprep.mubr.msk.bf16.mxu0 %vm1718_vm1, %v1717_v18 }
 0x3f1   :  { %1533 = vmatprep.subr.bf16.mxu0 %v1717_v18 }
 0x3f7   :  { %1524 = vmatmul.mubr.bf16.vlgmr.msra.gmra.mrb[28].mxu0 %v872_v36 }
 0x3f8   :  { %1549 = vmatprep.mubr.msk.bf16.mxu0 %vm1718_vm1, %v1717_v18  ;;  %1534 = vmatpush3.bf16.msra.mxu0 %v1644_v1 }
 0x3f9   :  { %1535 = vmatprep.subr.bf16.mxu0 %v1717_v18 }
 0x3fc   :  { %1536 = vmatpush3.bf16.msra.mxu0 %v1645_v2 }
 0x3fd   :  { %1537 = vmatprep.subr.bf16.mxu0 %v1717_v18 }
 0x400   :  { %1538 = vmatpush3.bf16.msra.mxu0 %v1646_v3  ;;  %v1404_v3 = vld [vmem:[%s2120_s3] ss:$0 sm:$0xff] }
 0x401   :  { %1539 = vmatprep.subr.bf16.mxu0 %v1717_v18 }
 0x404   :  { %1540 = vmatpush3.bf16.msra.mxu0 %v1647_v4 }
 0x405   :  { %1541 = vmatprep.subr.bf16.mxu0 %v1717_v18 }
 0x408   :  { %1542 = vmatpush3.bf16.msra.mxu0 %v1648_v5 }
 0x409   :  { %1543 = vmatprep.subr.bf16.mxu0 %v1717_v18 }
 0x40c   :  { %1544 = vmatpush3.bf16.msra.mxu0 %v1649_v46 }
 0x40d   :  { %1545 = vmatprep.subr.bf16.mxu0 %v1717_v18 }
 0x410   :  { %1546 = vmatpush3.bf16.msra.mxu0 %v1650_v49 }
 0x411   :  { %1547 = vmatprep.subr.bf16.mxu0 %v1717_v18 }
 0x414   :  { %1548 = vmatpush3.bf16.msra.mxu0 %v1651_v30 }
 0x4ba   :  { %v865_v23 = vpop.f32.mrb[16].mxu1 }
 0x4bb   :  { %v1519_v24 = vpop.f32.mrb[17].mxu1 }
 0x4bc   :  { %v868_v25 = vpop.f32.mrb[18].mxu1 }
 0x4bd   :  { %v1520_v26 = vpop.f32.mrb[19].mxu1 }
 0x4c2   :  { %v776_v27 = vpop.f32.mrb[24].mxu0 }
 0x4c3   :  { %v2001_v29 = vadd.f32 %v865_v23, %v776_v27  ;;  %v1499_v28 = vpop.f32.mrb[25].mxu0 }
 0x4c4   :  { %v779_v31 = vpop.f32.mrb[26].mxu0 }
 0x4c5   :  { %v2003_v32 = vadd.f32 %v868_v25, %v779_v31  ;;  %v1500_v41 = vpop.f32.mrb[27].mxu0 }
 0x4ca   :  { %v909_v42 = vpop.f32.mrb[28].mxu0 }
 0x4cb   :  { %v910_v43 = vadd.f32 %v909_v42, %v1867_v51  ;;  %v1525_v33 = vpop.f32.mrb[29].mxu0 }
 0x4cc   :  { %v912_v35 = vpop.f32.mrb[30].mxu0 }
 0x4cd   :  { %v913_v36 = vadd.f32 %v912_v35, %v1872_v53  ;;  %v1526_v45 = vpop.f32.mrb[31].mxu0  ;;  %v916_v47 = vsel %vm481_vm2, %v910_v43, -inf }
 0x4ce   :  { %917 = vmax.xlane.f32.xlu0 %v916_v47 }
 0x4cf   :  { %v919_v54 = vsel %vm481_vm2, %v913_v36, -inf }
 0x4d0   :  { %920 = vmax.xlane.f32.xlu1 %v919_v54  ;;  %v1652_v54 = vld [vmem:[%s2119_s2 + $0xc0] sm:$0xff]  }
 0x55b   :  { %v918_v55 = vpop.xlane.xlu0 %917 }
 0x55c   :  { %v922_v56 = vsub.f32 %v910_v43, %v918_v55 }
 0x55d   :  { %v921_v57 = vpop.xlane.xlu1 %920 }
 0x55e   :  { %v924_v58 = vmul.f32 1.442695, %v922_v56  ;;  %v923_v59 = vsub.f32 %v913_v36, %v921_v57  ;;  %v1655_v56 = vld [vmem:[%s2119_s2 + $0xd8] sm:$0xff]   ;;  %v1656_v57 = vld [vmem:[%s2119_s2 + $0xe0] sm:$0xff]  }
 0x560   :  { %1676 = vpow2.f32 %v924_v58  ;;  %v926_v60 = vmul.f32 1.442695, %v923_v59  ;;  %v1657_v58 = vld [vmem:[%s2119_s2 + $0xe8] sm:$0xff]   ;;  %v1658_v59 = vld [vmem:[%s2119_s2 + $0xf0] sm:$0xff]  }
 0x562   :  { %1678 = vpow2.f32 %v926_v60  ;;  %v1659_v60 = vld [vmem:[%s2119_s2 + $0xf8] sm:$0xff]  }
 0x56a   :  { %v1677_v61 = vpop.eup %1676 }
 0x56b   :  { %v928_v62 = vsel %vm481_vm2, %v1677_v61, 0.0 }
 0x56c   :  { %v1679_v63 = vpop.eup %1678  ;;  %929 = vadd.xlane.f32.xlu0 %v928_v62 }
 0x56d   :  { %v931_v0 = vsel %vm481_vm2, %v1679_v63, 0.0 }
 0x56e   :  { %932 = vadd.xlane.f32.xlu1 %v931_v0 }
 0x5f9   :  { %v930_v50 = vpop.xlane.xlu0 %929 }
 0x5fa   :  { %1680 = vrcp.f32 %v930_v50 }
 0x5fb   :  { %v933_v6 = vpop.xlane.xlu1 %932 }
 0x5fc   :  { %1682 = vrcp.f32 %v933_v6 }
 0x604   :  { %v1681_v7 = vpop.eup %1680 }
 0x605   :  { %v936_v9 = vmul.f32 %v1681_v7, %v1677_v61 }
 0x606   :  { %v1683_v8 = vpop.eup %1682 }
 0x607   :  { %v937_v10 = vmul.f32 %v1683_v8, %v1679_v63 }
 0x609   :  { %v938_v11 = vpack.c.bf16 %v937_v10, %v936_v9 }
 0x60b   :  { %1530 = vmatmul.mubr.msk.bf16.vlgmr.msra.gmra.mrb[20].mxu1 %vm481_vm2, %v938_v11 }
 0x60c   :  { %1554 = vmatpush3.bf16.xpose.msra.mxu1 %v1092_v40  ;;  %1555 = vmatprep.mubr.msk.bf16.mxu1 %vm1718_vm1, %v1717_v18 }
 0x60d   :  { %1559 = vmatprep.subr.bf16.mxu1 %v1717_v18 }
 0x613   :  { %1556 = vmatmul.mubr.bf16.vlgmr.msra.gmra.mrb[24].mxu1 %v1091_v38 }
 0x614   :  { %1560 = vmatpush3.bf16.msra.mxu1 %v1093_v52  ;;  %1561 = vmatprep.mubr.msk.bf16.mxu1 %vm1718_vm1, %v1717_v18 }
 0x615   :  { %1565 = vmatprep.subr.bf16.mxu1 %v1717_v18 }
 0x6de   :  { %v976_v39 = vpop.f32.mrb[20].mxu1 }
 0x6df   :  { %v1531_v40 = vpop.f32.mrb[21].mxu1 }
 0x6e0   :  { %v979_v12 = vpop.f32.mrb[22].mxu1 }
 0x6e1   :  { %v999_v13 = vpack.c.bf16 %v979_v12, %v976_v39  ;;  %v1532_v34 = vpop.f32.mrb[23].mxu1 }
 0x6e3   :  { %1550 = vmatmul.mubr.bf16.vlgmr.msra.gmra.mrb[32].mxu0 %v999_v13 }
 0x6e6   :  { %v1128_v37 = vpop.f32.mrb[24].mxu1 }
 0x6e7   :  { %v1129_v38 = vadd.f32 %v1128_v37, %v1867_v51  ;;  %v1557_v44 = vpop.f32.mrb[25].mxu1 }
 0x6e8   :  { %v1131_v48 = vpop.f32.mrb[26].mxu1 }
 0x6e9   :  { %v1132_v52 = vadd.f32 %v1131_v48, %v1872_v53  ;;  %v1558_v14 = vpop.f32.mrb[27].mxu1  ;;  %v1135_v15 = vsel %vm481_vm2, %v1129_v38, -inf }
 0x6ea   :  { %1136 = vmax.xlane.f32.xlu0 %v1135_v15 }
 0x6eb   :  { %v1138_v16 = vsel %vm481_vm2, %v1132_v52, -inf }
 0x6ec   :  { %1139 = vmax.xlane.f32.xlu1 %v1138_v16 }
 0x777   :  { %v1137_v17 = vpop.xlane.xlu0 %1136 }
 0x778   :  { %v1141_v19 = vsub.f32 %v1129_v38, %v1137_v17 }
 0x779   :  { %v1140_v20 = vpop.xlane.xlu1 %1139 }
 0x77a   :  { %v1143_v21 = vmul.f32 1.442695, %v1141_v19  ;;  %v1142_v22 = vsub.f32 %v1132_v52, %v1140_v20 }
 0x77c   :  { %1684 = vpow2.f32 %v1143_v21  ;;  %v1145_v23 = vmul.f32 1.442695, %v1142_v22 }
 0x77e   :  { %1686 = vpow2.f32 %v1145_v23 }
 0x786   :  { %v1685_v51 = vpop.eup %1684 }
 0x787   :  { %v1147_v24 = vsel %vm481_vm2, %v1685_v51, 0.0 }
 0x788   :  { %v1687_v25 = vpop.eup %1686  ;;  %1148 = vadd.xlane.f32.xlu0 %v1147_v24 }
 0x789   :  { %v1150_v53 = vsel %vm481_vm2, %v1687_v25, 0.0 }
 0x78a   :  { %1151 = vadd.xlane.f32.xlu1 %v1150_v53 }
 0x7b6   :  { %v1082_v26 = vpop.f32.mrb[32].mxu0 }
 0x7b7   :  { %v1089_v27 = vadd.f32 %v1082_v26, %v2001_v29  ;;  %v1551_v28 = vpop.f32.mrb[33].mxu0  ;;  %v1653_v29 = vld [vmem:[%s2119_s2 + $0xc8] sm:$0xff]  }
 0x7b8   :  { %v1085_v31 = vpop.f32.mrb[34].mxu0 }
 0x7b9   :  { %v1090_v41 = vadd.f32 %v1085_v31, %v2003_v32  ;;  %v1552_v42 = vpop.f32.mrb[35].mxu0  ;;  %v1654_v32 = vld [vmem:[%s2119_s2 + $0xd0] sm:$0xff]   ;;  %s1692_s2 = scalar_lea.vmem %s1327_s29, 256 }
 0x7ba   :  { %p1693_p0 = scmp.ne.s32.totalorder %s1327_s29, %s1692_s2  ;;  %p1698_p2 = scmp.lt.s32.totalorder %s1692_s2, %s1692_s2 }
 0x7bc   :  { %p1699_p3 = por %p1698_p2, %p1697_p1 }
 0x7be   :  { %p1700_p4 = pnand %p1699_p3, %p1693_p0 }
 0x815   :  { %v1149_v43 = vpop.xlane.xlu0 %1148 }
 0x816   :  { %1688 = vrcp.f32 %v1149_v43 }
 0x817   :  { %v1152_v33 = vpop.xlane.xlu1 %1151 }
 0x818   :  { %1690 = vrcp.f32 %v1152_v33 }
 0x820   :  { %v1689_v35 = vpop.eup %1688 }
 0x821   :  { %v1155_v45 = vmul.f32 %v1689_v35, %v1685_v51 }
 0x822   :  { %v1691_v36 = vpop.eup %1690 }
 0x823   :  { %v1156_v47 = vmul.f32 %v1691_v36, %v1687_v25 }
 0x825   :  { %v1157_v55 = vpack.c.bf16 %v1156_v47, %v1155_v45 }
 0x827   :  { %1562 = vmatmul.mubr.msk.bf16.vlgmr.msra.gmra.mrb[28].mxu1 %vm481_vm2, %v1157_v55 }
 0x828   :  { %1566 = vmatpush3.bf16.msra.mxu1 %v1652_v54  ;;  %1581 = vmatprep.mubr.msk.bf16.mxu1 %vm1718_vm1, %v1717_v18 }
 0x829   :  { %1567 = vmatprep.subr.bf16.mxu1 %v1717_v18 }
 0x82c   :  { %1568 = vmatpush3.bf16.msra.mxu1 %v1653_v29 }
 0x82d   :  { %1569 = vmatprep.subr.bf16.mxu1 %v1717_v18 }
 0x830   :  { %1570 = vmatpush3.bf16.msra.mxu1 %v1654_v32 }
 0x831   :  { %1571 = vmatprep.subr.bf16.mxu1 %v1717_v18 }
 0x834   :  { %1572 = vmatpush3.bf16.msra.mxu1 %v1655_v56 }
 0x835   :  { %1573 = vmatprep.subr.bf16.mxu1 %v1717_v18 }
 0x838   :  { %1574 = vmatpush3.bf16.msra.mxu1 %v1656_v57 }
 0x839   :  { %1575 = vmatprep.subr.bf16.mxu1 %v1717_v18 }
 0x83c   :  { %1576 = vmatpush3.bf16.msra.mxu1 %v1657_v58 }
 0x83d   :  { %1577 = vmatprep.subr.bf16.mxu1 %v1717_v18 }
 0x840   :  { %1578 = vmatpush3.bf16.msra.mxu1 %v1658_v59 }
 0x841   :  { %1579 = vmatprep.subr.bf16.mxu1 %v1717_v18 }
 0x844   :  { %1580 = vmatpush3.bf16.msra.mxu1 %v1659_v60 }
 0x8fa   :  { %v1195_v61 = vpop.f32.mrb[28].mxu1 }
 0x8fb   :  { %v1563_v62 = vpop.f32.mrb[29].mxu1 }
 0x8fc   :  { %v1198_v63 = vpop.f32.mrb[30].mxu1 }
 0x8fd   :  { %v1218_v0 = vpack.c.bf16 %v1198_v63, %v1195_v61  ;;  %v1564_v1 = vpop.f32.mrb[31].mxu1 }
 0x8ff   :  { %1582 = vmatmul.mubr.bf16.vlgmr.msra.gmra.mrb[32].mxu1 %v1218_v0 }
 0x9d2   :  { %v1301_v2 = vpop.f32.mrb[32].mxu1 }
 0x9d3   :  { %v1308_v4 = vadd.f32 %v1301_v2, %v1089_v27  ;;  %v1583_v5 = vpop.f32.mrb[33].mxu1 }
 0x9d4   :  { %v1304_v46 = vpop.f32.mrb[34].mxu1 }
 0x9d5   :  { %v1317_v18 = vadd.f32 %v1404_v3, %v1308_v4  ;;  %v1309_v49 = vadd.f32 %v1304_v46, %v1090_v41  ;;  %v1584_v50 = vpop.f32.mrb[35].mxu1 }
 0x9d7   :  { %1319 = vst.msk [vmem:[#allocation2] sm:$0xff] %vm173_vm0, %v1317_v18  ;;  %v1318_v6 = vadd.f32 %v1404_v3, %v1309_v49 }
 0x9d9   :  { %1320 = vst.msk [vmem:[#allocation2 + $0x8] sm:$0xff] %vm173_vm0, %v1318_v6 }
 0x9da   :  { %1703 = shalt.err (!%p1700_p4)
}
 0x9db   :  { %s1704_s6 = scalar_lea.hbm %s2122_s5, 256 }
 0x9dc   :  { %p1705_p5 = scmp.ne.s32.totalorder %s2122_s5, %s1704_s6  ;;  %p1708_p6 = scmp.lt.u32.totalorder %s1704_s6, %s2122_s5 }
 0x9de   :  { %p1710_p7 = pnand %p1708_p6, %p1705_p5 }
 0x9e0   :  { %1713 = shalt.err (!%p1710_p7)
}
 0x9e1   :  { %s1720_s11 = smov 128   ;;  %s1721_s12 = smov 8  }
 0x9e2   :  { %1332 = dma.vmem_to_hbm [thread:$0]  %s1327_s29, 256, %s2122_s5, [#allocation3], %s1720_s11, %s1720_s11, %s1721_s12  }
 0x9e3   :  { %1714 = dma.done.wait [#allocation3], 256  }
 0x9e4   :  { %1715 = vsyncadd [#allocation3], 4294967040 }
 0x9e5   :  { %1336 = vsyncpa [#allocation3], 1 }

</bundles_post_ra>
